<compile_context>
chip_gen: v7x
topology: tpu7x:2x2x1
jax: 0.10.0
libtpu: 0.0.40
codegen_flags: <defaults>
</compile_context>

<pallas_src>
import jax
import jax.numpy as jnp
from jax.experimental import pallas as pl
from jax.experimental.pallas import tpu as pltpu

_LANES = 1024  # lane-dense last dim (multiple of 128) -> unmasked stores


def _round_up(x: int, m: int) -> int:
    return -(-x // m) * m


def _max_row_tile() -> int:
    """Generation-aware max tile height (rows of 1024 f32 lanes)."""
    try:
        kind = jax.devices()[0].device_kind.lower()
    except Exception:
        kind = ""
    if "v5 lite" in kind or "v5lite" in kind or "v5e" in kind:
        return 512   # 2 MiB tile -> 8 MiB double-buffered, fits v5e's 16 MiB scoped VMEM
    return 1024      # v6e / v7x: 4 MiB tile -> 16 MiB double-buffered


def _linear_kernel(x_ref, w_ref, b_ref, o_ref):
    # x_ref / o_ref: (row_tile, _LANES) VMEM tiles.
    # w_ref / b_ref: (1,) float32 scalars resident in SMEM.
    w = w_ref[0]
    b = b_ref[0]
    o_ref[...] = (x_ref[...] * w + b).astype(o_ref.dtype)


def linear_regression_v2(x: jax.Array, w: jax.Array, b: jax.Array) -> jax.Array:
    """Forward of nn.Linear(1, 1): y = x @ W^T + b (== x * w + b elementwise).

    x: (..., 1) floating array (typically (N, 1) float32)
    w: (1, 1)   weight, torch layout [out_features, in_features]
    b: (1,)     bias
    Returns an array with the same shape/dtype as x.
    Note: non-f32/bf16 inputs are computed in f32 and cast back (precision caveat).
    """
    orig_shape = x.shape
    orig_dtype = x.dtype
    compute_dtype = x.dtype if x.dtype in (jnp.float32, jnp.bfloat16) else jnp.float32
    flat = x.reshape(-1).astype(compute_dtype)
    total = flat.shape[0]

    rows = max(1, -(-total // _LANES))           # ceil(total / 1024)
    aligned = (rows * _LANES == total)

    max_tile = _max_row_tile()
    if rows <= 8:
        row_tile = rows                          # full-extent second-minor dim (always legal)
    else:
        # Keep >= ~8 grid steps before maxing the tile (2-TC utilization on v7x);
        # row_tile stays a multiple of 8 for the (8, 128) tiling constraint.
        row_tile = min(max_tile, _round_up(pl.cdiv(rows, 8), 8))

    if not aligned:
        # Minimal lane-tail pad (< 1024 elements).  Partial *row* blocks at the
        # grid edge are masked by Pallas (cdiv grid), so no rounding to tile
        # multiples is ever needed.
        # TODO(synk): a fully in-kernel tail mask would need a non-lane-dense
        # 1-D layout; the pad/slice here only triggers for non-1024-aligned N.
        flat = jnp.pad(flat, (0, rows * _LANES - total))
    slab = flat.reshape(rows, _LANES)

    # Scalars go to SMEM (32-bit), kept in float32 for full-precision params.
    w_s = w.reshape(1).astype(jnp.float32)
    b_s = b.reshape(1).astype(jnp.float32)

    out_slab = pl.pallas_call(
        _linear_kernel,
        out_shape=jax.ShapeDtypeStruct((rows, _LANES), compute_dtype),
        grid_spec=pltpu.PrefetchScalarGridSpec(
            num_scalar_prefetch=0,
            grid=(pl.cdiv(rows, row_tile),),
            in_specs=[
                pl.BlockSpec((row_tile, _LANES), lambda i: (i, 0)),
                pl.BlockSpec(memory_space=pltpu.MemorySpace.SMEM),
                pl.BlockSpec(memory_space=pltpu.MemorySpace.SMEM),
            ],
            out_specs=pl.BlockSpec((row_tile, _LANES), lambda i: (i, 0)),
        ),
        compiler_params=pltpu.CompilerParams(
            dimension_semantics=("parallel",),
            vmem_limit_bytes=40 * 1024 * 1024,   # headroom for 4 MiB tiles on all gens
        ),
    )(slab, w_s, b_s)

    out_flat = out_slab.reshape(-1)
    if not aligned:
        out_flat = out_flat[:total]
    return out_flat.reshape(orig_shape).astype(orig_dtype)


if __name__ == "__main__":
    key = jax.random.PRNGKey(0)
    kx, kw, kb, kx2, kx3, kx4 = jax.random.split(key, 6)

    # Deterministic parameter init (mirrors torch default U(-1, 1) for fan_in=1).
    weight = jax.random.uniform(kw, (1, 1), jnp.float32, minval=-1.0, maxval=1.0)
    bias = jax.random.uniform(kb, (1,), jnp.float32, minval=-1.0, maxval=1.0)

    # Small canonical case: batch of 8 scalar features.
    x = jax.random.normal(kx, (8, 1), jnp.float32)
    y = linear_regression_v2(x, weight, bias)
    jax.block_until_ready(y)
    assert y.shape == (8, 1)
    assert jnp.allclose(y, x @ weight.T + bias, atol=1e-6), "mismatch (N=8)"

    # Ragged lane tail (3000 % 1024 != 0), single grid step.
    x2 = jax.random.normal(kx2, (3000, 1), jnp.float32)
    y2 = linear_regression_v2(x2, weight, bias)
    jax.block_until_ready(y2)
    assert jnp.allclose(y2, x2 @ weight.T + bias, atol=1e-6), "mismatch (N=3000)"

    # 1024-aligned, multi-step grid: zero wrapper copies (metadata reshapes only).
    x3 = jax.random.normal(kx3, (16384, 1), jnp.float32)
    y3 = linear_regression_v2(x3, weight, bias)
    jax.block_until_ready(y3)
    assert jnp.allclose(y3, x3 @ weight.T + bias, atol=1e-6), "mismatch (N=16384)"

    # Multi-step grid with a partial edge row-block (20 rows, tile 8 -> 3 steps).
    x4 = jax.random.normal(kx4, (20000, 1), jnp.float32)
    y4 = linear_regression_v2(x4, weight, bias)
    jax.block_until_ready(y4)
    assert jnp.allclose(y4, x4 @ weight.T + bias, atol=1e-6), "mismatch (N=20000)"

    print("KERNEL_OK")
</pallas_src>

<mosaic_0001>
module attributes {stable_mosaic.version = 11 : i64} {
  func.func @_linear_kernel(%arg0: i32, %arg1: memref<1x1024xf32, #tpu.memory_space<vmem>>, %arg2: memref<1xf32, #tpu.memory_space<smem>>, %arg3: memref<1xf32, #tpu.memory_space<smem>>, %arg4: memref<1x1024xf32, #tpu.memory_space<vmem>>) attributes {dimension_semantics = [#tpu.dimension_semantics<parallel>], iteration_bounds = array<i64: 1>, scalar_prefetch = 0 : i64, scratch_operands = 0 : i64, tpu.core_type = #tpu.core_type<tc>, window_params = [{transform_indices = @transform_0, window_bounds = array<i64: 1, 1024>}, {transform_indices = @transform_1, window_bounds = array<i64: 1>}, {transform_indices = @transform_2, window_bounds = array<i64: 1>}, {transform_indices = @transform_3, window_bounds = array<i64: 1, 1024>}]} {
    %c0 = arith.constant 0 : index
    %0 = memref.load %arg2[%c0] : memref<1xf32, #tpu.memory_space<smem>>
    %c0_0 = arith.constant 0 : index
    %1 = memref.load %arg3[%c0_0] : memref<1xf32, #tpu.memory_space<smem>>
    %c0_1 = arith.constant 0 : index
    %c0_2 = arith.constant 0 : index
    %2 = vector.load %arg1[%c0_1, %c0_2] : memref<1x1024xf32, #tpu.memory_space<vmem>>, vector<1x1024xf32>
    %3 = vector.broadcast %0 : f32 to vector<1x1024xf32>
    %4 = arith.mulf %2, %3 : vector<1x1024xf32>
    %5 = vector.broadcast %1 : f32 to vector<1x1024xf32>
    %6 = arith.addf %4, %5 : vector<1x1024xf32>
    %c0_3 = arith.constant 0 : index
    %c0_4 = arith.constant 0 : index
    %7 = vector.load %arg4[%c0_3, %c0_4] : memref<1x1024xf32, #tpu.memory_space<vmem>>, vector<1x1024xf32>
    tpu.vector_store %arg4[%c0_3, %c0_4], %6 {strides = array<i32>} : memref<1x1024xf32, #tpu.memory_space<vmem>>, vector<1x1024xf32>,
    return
  }
  func.func @transform_0(%arg0: i32) -> (i32, i32) {
    %c0_i32 = arith.constant 0 : i32
    %c0_i32_0 = arith.constant 0 : i32
    return %arg0, %c0_i32 : i32, i32
  }
  func.func @transform_1(%arg0: i32) -> i32 {
    %c0_i32 = arith.constant 0 : i32
    %c0_i32_0 = arith.constant 0 : i32
    return %c0_i32 : i32
  }
  func.func @transform_2(%arg0: i32) -> i32 {
    %c0_i32 = arith.constant 0 : i32
    %c0_i32_0 = arith.constant 0 : i32
    return %c0_i32 : i32
  }
  func.func @transform_3(%arg0: i32) -> (i32, i32) {
    %c0_i32 = arith.constant 0 : i32
    %c0_i32_0 = arith.constant 0 : i32
    return %arg0, %c0_i32 : i32, i32
  }
}

</mosaic_0001>

<bundles_post_ra>
// kernel: tpu_custom_call.1
= control target key start
LH: loop header
LB: loop body
LE: loop exit
PB: predicated region body
PF: predicated region fallthrough
CT: control target
= control target key end

     0   :  { %10 = vsyncpa [#allocation5], 0  ;;  %s154_s0 = inlined_call_operand.hbm [shape: f32[1,1024], index: 0, kind: input, shape index: {}]   ;;  %s155_s1 = inlined_call_operand.<no memory space> [shape: f32[1], index: 1, kind: input, shape index: {}]   ;;  %s156_s2 = inlined_call_operand.<no memory space> [shape: f32[1], index: 2, kind: input, shape index: {}]   ;;  %s157_s3 = inlined_call_operand.hbm [shape: f32[1,1024], index: 3, kind: output, shape index: {}]  }
   0x1   :  { %11 = vsyncpa [#allocation6], 0  ;;  %s102_s12 = smov [#allocation4]   ;;  %s54_s16 = scalar_lea.hbm %s154_s0, 128 }
   0x2   :  { %s18_s13 = sshll.u32 %s102_s12, 4  ;;  %p55_p0 = scmp.ne.s32.totalorder %s154_s0, %s54_s16  ;;  %s19_s13 = int_to_ptr.vmem [resolvable:$true] %s18_s13 }
   0x3   :  { %p58_p1 = scmp.lt.u32.totalorder %s54_s16, %s154_s0 }
   0x5   :  { %p60_p2 = pnand %p58_p1, %p55_p0 }
   0x7   :  { %63 = shalt.err (!%p60_p2)
}
   0x8   :  { %s64_s21 = scalar_lea.vmem %s19_s13, 128  ;;  %p69_p4 = scmp.lt.s32.totalorder %s19_s13, %s19_s13 }
   0x9   :  { %p65_p3 = scmp.ne.s32.totalorder %s19_s13, %s64_s21  ;;  %p70_p5 = scmp.lt.s32.totalorder %s64_s21, %s64_s21 }
   0xb   :  { %p71_p6 = por %p70_p5, %p69_p4 }
   0xd   :  { %p72_p7 = pnand %p71_p6, %p65_p3 }
   0xf   :  { %75 = shalt.err (!%p72_p7)
}
  0x10   :  { %21 = dma.hbm_to_vmem [thread:$0]  %s154_s0, 128, %s19_s13, [#allocation5]  }
  0x11   :  { %98 = dma.done.wait [#allocation5], 128  }
  0x12   :  { %99 = vsyncadd [#allocation5], 4294967168  ;;  %v32_v0 = vstv %s155_s1  ;;  %v31_v1 = vld [vmem:[#allocation4] sm:$0xff]  ;;  %v34_v2 = vstv %s156_s2  ;;  %s103_s28 = smov [#allocation7]  }
  0x13   :  { %s43_s29 = sshll.u32 %s103_s28, 4  ;;  %v33_v3 = vmul.f32 %v32_v0, %v31_v1  ;;  %s44_s29 = int_to_ptr.vmem [resolvable:$true] %s43_s29 }
  0x14   :  { %s76_s30 = scalar_lea.vmem %s44_s29, 128  ;;  %p81_p9 = scmp.lt.s32.totalorder %s44_s29, %s44_s29 }
  0x15   :  { %v35_v4 = vadd.f32 %v34_v2, %v33_v3  ;;  %p77_p8 = scmp.ne.s32.totalorder %s44_s29, %s76_s30  ;;  %p82_p10 = scmp.lt.s32.totalorder %s76_s30, %s76_s30 }
  0x17   :  { %36 = vst [vmem:[#allocation7] sm:$0xff] %v35_v4  ;;  %p83_p11 = por %p82_p10, %p81_p9 }
  0x19   :  { %p84_p12 = pnand %p83_p11, %p77_p8 }
  0x1b   :  { %87 = shalt.err (!%p84_p12)
}
  0x1c   :  { %s88_s4 = scalar_lea.hbm %s157_s3, 128 }
  0x1d   :  { %p89_p13 = scmp.ne.s32.totalorder %s157_s3, %s88_s4  ;;  %p92_p0 = scmp.lt.u32.totalorder %s88_s4, %s157_s3 }
  0x1f   :  { %p94_p1 = pnand %p92_p0, %p89_p13 }
  0x21   :  { %97 = shalt.err (!%p94_p1)
}
  0x22   :  { %46 = dma.vmem_to_hbm [thread:$0]  %s44_s29, 128, %s157_s3, [#allocation6]  }
  0x23   :  { %100 = dma.done.wait [#allocation6], 128  }
  0x24   :  { %101 = vsyncadd [#allocation6], 4294967168 }
  0x25   :  { %50 = vsyncpa [#allocation5], 1 }
  0x26   :  { %51 = vsyncpa [#allocation6], 1 }

</bundles_post_ra>
